<compile_context>
chip_gen: v7x
topology: tpu7x:2x2x1
jax: 0.10.0
libtpu: 0.0.40
codegen_flags: <defaults>
</compile_context>

<pallas_src>
import jax
import jax.numpy as jnp
from jax.experimental import pallas as pl
from jax.experimental.pallas import tpu as pltpu


def _avg_attention_kernel(mask_ref, x_ref, o_ref, carry_ref):
    # mask_ref : (TS, TS) 0/1 lower-triangular, same dtype as the inputs.
    # x_ref    : (TS, TD) input tile (native dtype).
    # o_ref    : (TS, TD) output tile.
    # carry_ref: (1, TD) f32 running column-sum of previous sequence tiles.
    TS = x_ref.shape[0]
    s = pl.program_id(2)  # sequence-tile index (innermost, "arbitrary")

    @pl.when(s == 0)
    def _init():
        carry_ref[...] = jnp.zeros_like(carry_ref)

    x = x_ref[...]  # keep native dtype -> bf16 MXU when inputs are bf16
    # In-tile inclusive prefix-sum via 0/1 mask matmul; accumulate in f32.
    csum = jnp.dot(mask_ref[...], x, preferred_element_type=jnp.float32)
    total = csum + carry_ref[...]                # add carried prefix of earlier tiles
    carry_ref[...] = total[TS - 1:TS, :]         # new carry = sum through this tile

    # Per-row 1/(t+1) scaling (only TS reciprocals per step, f32).
    row = jax.lax.broadcasted_iota(jnp.int32, (TS, 1), 0) + s * TS
    row_f = row.astype(jnp.float32) + 1.0
    if o_ref.dtype == jnp.bfloat16:
        inv = pl.reciprocal(row_f, approx=True)  # EUP slot; error << bf16 ulp
    else:
        inv = 1.0 / row_f                        # exact for f32 outputs
    o_ref[...] = (total * inv).astype(o_ref.dtype)


def _num_tensorcores_per_chip():
    """Best-effort detection of dual-TensorCore chips (v7x)."""
    try:
        kind = jax.devices()[0].device_kind.lower()
    except Exception:
        return 1
    return 2 if ("v7" in kind or "7x" in kind) else 1


def _pick_seq_tile(S, dtype):
    """Returns (TS, S_padded). TS is dtype-aware and bounded; S may be padded."""
    itemsize = jnp.dtype(dtype).itemsize
    sub_pack = 8 * max(1, 4 // itemsize)         # 8 rows f32, 16 rows bf16 per vreg
    big = (256, 128) if itemsize <= 2 else (128, 64)
    for t in big:
        if S % t == 0:
            return t, S
    if S <= big[0]:
        s_pad = -(-S // sub_pack) * sub_pack     # full-extent tile, sublane aligned
        return s_pad, s_pad
    s_pad = -(-S // big[0]) * big[0]             # pad instead of SxS dense fallback
    return big[0], s_pad


def _pick_d_tile(D, TS, itemsize, *, budget_bytes, min_blocks=1):
    """Largest D-tile fitting the VMEM budget; prefers TD == D (contiguous DMA),
    unless min_blocks > 1 asks for a split (v7x megacore with B == 1)."""
    cands = [D]
    for t in (4096, 2048, 1024, 512, 256, 128):
        if t < D and D % t == 0:
            cands.append(t)

    def footprint(t):
        # double-buffered in + out tiles, resident mask (x2 headroom), f32 carry
        return itemsize * (4 * TS * t + 2 * TS * TS) + 8 * t

    pref = [t for t in cands if D // t >= min_blocks and footprint(t) <= budget_bytes]
    if pref:
        return max(pref)
    fit = [t for t in cands if footprint(t) <= budget_bytes]
    if fit:
        return max(fit)
    return min(cands)


def average_attention(inputs, *, seq_tile=None, d_tile=None):
    """inputs: (B, S, D) -> (B, S, D) cumulative average over axis=1."""
    B, S, D = inputs.shape
    dtype = inputs.dtype
    itemsize = jnp.dtype(dtype).itemsize

    if seq_tile is None:
        TS, S_pad = _pick_seq_tile(S, dtype)
    else:
        TS = seq_tile
        S_pad = -(-S // TS) * TS

    # Split D across cores only when batch alone cannot feed both TensorCores.
    min_d_blocks = 2 if (B == 1 and _num_tensorcores_per_chip() >= 2) else 1
    budget = 24 << 20                            # per-step pipeline VMEM budget
    if d_tile is None:
        TD = _pick_d_tile(D, TS, itemsize, budget_bytes=budget,
                          min_blocks=min_d_blocks)
    else:
        TD = d_tile
    assert S_pad % TS == 0 and D % TD == 0, "tile sizes must divide (S_pad, D)"

    # Explicit scoped-VMEM limit (v5e default is only 16 MiB); cap well under
    # v7x's 64 MiB physical VMEM.
    pipeline_bytes = itemsize * (4 * TS * TD + 2 * TS * TS) + 8 * TD
    vmem_limit = int(min(max(2 * pipeline_bytes, 32 << 20), 56 << 20))

    # 0/1 lower-triangular mask -- exactly representable in bf16, built once
    # outside the kernel and kept VMEM-resident via a constant index_map.
    mask = jnp.tril(jnp.ones((TS, TS), dtype=dtype))

    # Pad the sequence axis (trailing zero rows never affect earlier prefixes).
    x = inputs
    if S_pad != S:
        x = jnp.pad(inputs, ((0, 0), (0, S_pad - S), (0, 0)))

    grid = (B, D // TD, S_pad // TS)

    kernel = pl.pallas_call(
        _avg_attention_kernel,
        out_shape=jax.ShapeDtypeStruct((B, S_pad, D), dtype),
        grid_spec=pltpu.PrefetchScalarGridSpec(
            num_scalar_prefetch=0,
            grid=grid,
            in_specs=[
                pl.BlockSpec((TS, TS), lambda b, d, s: (0, 0)),        # resident mask
                pl.BlockSpec((None, TS, TD), lambda b, d, s: (b, s, d)),
            ],
            out_specs=pl.BlockSpec((None, TS, TD), lambda b, d, s: (b, s, d)),
            scratch_shapes=[pltpu.VMEM((1, TD), jnp.float32)],          # carry
        ),
        compiler_params=pltpu.CompilerParams(
            dimension_semantics=("parallel", "parallel", "arbitrary"),
            vmem_limit_bytes=vmem_limit,
        ),
        cost_estimate=pl.CostEstimate(
            flops=2 * B * S_pad * TS * D,
            transcendentals=0,
            bytes_accessed=2 * B * S_pad * D * itemsize,
        ),
    )
    out = kernel(mask, x)
    if S_pad != S:
        out = out[:, :S, :]
    return out


def _reference(inputs):
    # Pure-JAX reference: running mean along the sequence axis (f32 accumulate).
    csum = jnp.cumsum(inputs.astype(jnp.float32), axis=1)
    denom = jnp.arange(1, inputs.shape[1] + 1, dtype=jnp.float32)[None, :, None]
    return (csum / denom).astype(inputs.dtype)


if __name__ == "__main__":
    # Small deterministic test (f32, full-extent tiles, exact reciprocal path).
    B, S, D = 2, 8, 32
    x = jax.random.normal(jax.random.PRNGKey(0), (B, S, D), dtype=jnp.float32)
    out = jax.block_until_ready(average_attention(x))
    ref = _reference(x)
    assert out.shape == (B, S, D)
    assert jnp.allclose(out, ref, atol=1e-5, rtol=1e-5)

    # bf16 test exercising the blocked prefix-sum carry, auto D-tiling and the
    # approximate-reciprocal epilogue (B=1 also exercises the megacore split
    # heuristic on dual-core chips).
    B2, S2, D2 = 1, 512, 256
    x2 = jax.random.normal(jax.random.PRNGKey(1), (B2, S2, D2), dtype=jnp.bfloat16)
    out2 = jax.block_until_ready(average_attention(x2))
    ref2 = _reference(x2)
    assert out2.shape == (B2, S2, D2)
    assert jnp.allclose(out2.astype(jnp.float32), ref2.astype(jnp.float32),
                        atol=1e-2, rtol=2e-2)

    # f32 test with an awkward sequence length to exercise the padding path
    # (bounded TS instead of a dense SxS mask fallback).
    B3, S3, D3 = 2, 200, 128
    x3 = jax.random.normal(jax.random.PRNGKey(2), (B3, S3, D3), dtype=jnp.float32)
    out3 = jax.block_until_ready(average_attention(x3))
    ref3 = _reference(x3)
    assert out3.shape == (B3, S3, D3)
    assert jnp.allclose(out3, ref3, atol=1e-4, rtol=1e-4)

    print("KERNEL_OK")
</pallas_src>

<mosaic_0001>
module attributes {stable_mosaic.version = 11 : i64} {
  func.func @_avg_attention_kernel(%arg0: i32, %arg1: i32, %arg2: i32, %arg3: memref<8x8xf32, #tpu.memory_space<vmem>>, %arg4: memref<1x8x32xf32, #tpu.memory_space<vmem>>, %arg5: memref<1x8x32xf32, #tpu.memory_space<vmem>>, %arg6: memref<1x32xf32, #tpu.memory_space<vmem>>) attributes {dimension_semantics = [#tpu.dimension_semantics<parallel>, #tpu.dimension_semantics<parallel>, #tpu.dimension_semantics<arbitrary>], iteration_bounds = array<i64: 2, 1, 1>, scalar_prefetch = 0 : i64, scratch_operands = 1 : i64, tpu.core_type = #tpu.core_type<tc>, window_params = [{pipeline_mode = #tpu.pipeline_mode<synchronous>, transform_indices = @transform_0, window_bounds = array<i64: 8, 8>}, {transform_indices = @transform_1, window_bounds = array<i64: 1, 8, 32>}, {transform_indices = @transform_2, window_bounds = array<i64: 1, 8, 32>}]} {
    %c0_i32 = arith.constant 0 : i32
    %0 = arith.cmpi eq, %arg2, %c0_i32 : i32
    %1 = arith.extui %0 : i1 to i32
    %c0_i32_0 = arith.constant 0 : i32
    %2 = arith.cmpi ne, %1, %c0_i32_0 : i32
    scf.if %2 {
      %cst_14 = arith.constant 0.000000e+00 : f32
      %26 = vector.broadcast %cst_14 : f32 to vector<1x32xf32>
      %c0_15 = arith.constant 0 : index
      %c0_16 = arith.constant 0 : index
      %27 = vector.load %arg6[%c0_15, %c0_16] : memref<1x32xf32, #tpu.memory_space<vmem>>, vector<1x32xf32>
      tpu.vector_store %arg6[%c0_15, %c0_16], %26 {strides = array<i32>} : memref<1x32xf32, #tpu.memory_space<vmem>>, vector<1x32xf32>,
    } else {
    }
    %c0 = arith.constant 0 : index
    %c0_1 = arith.constant 0 : index
    %c0_2 = arith.constant 0 : index
    %3 = vector.load %arg4[%c0, %c0_1, %c0_2] : memref<1x8x32xf32, #tpu.memory_space<vmem>>, vector<1x8x32xf32>
    %4 = vector.shape_cast %3 : vector<1x8x32xf32> to vector<8x32xf32>
    %c0_3 = arith.constant 0 : index
    %c0_4 = arith.constant 0 : index
    %5 = vector.load %arg3[%c0_3, %c0_4] : memref<8x8xf32, #tpu.memory_space<vmem>>, vector<8x8xf32>
    %cst = arith.constant dense<0.000000e+00> : vector<8x32xf32>
    %6 = tpu.matmul %5, %4, %cst {dimension_numbers = #tpu.dot_dimension_numbers<[1], [0], [0], [1], [0, 0, 1, 1], [], []>} : vector<8x8xf32>, vector<8x32xf32>, vector<8x32xf32> -> vector<8x32xf32>
    %c0_5 = arith.constant 0 : index
    %c0_6 = arith.constant 0 : index
    %7 = vector.load %arg6[%c0_5, %c0_6] : memref<1x32xf32, #tpu.memory_space<vmem>>, vector<1x32xf32>
    %8 = vector.broadcast %7 : vector<1x32xf32> to vector<8x32xf32>
    %9 = arith.addf %6, %8 : vector<8x32xf32>
    %10 = vector.extract_strided_slice %9 {offsets = [7, 0], sizes = [1, 32], strides = [1, 1]} : vector<8x32xf32> to vector<1x32xf32>
    %c0_7 = arith.constant 0 : index
    %c0_8 = arith.constant 0 : index
    %11 = vector.load %arg6[%c0_7, %c0_8] : memref<1x32xf32, #tpu.memory_space<vmem>>, vector<1x32xf32>
    tpu.vector_store %arg6[%c0_7, %c0_8], %10 {strides = array<i32>} : memref<1x32xf32, #tpu.memory_space<vmem>>, vector<1x32xf32>,
    %12 = tpu.iota {dimensions = array<i32: 0>} : vector<8x1xi32>
    %c8_i32 = arith.constant 8 : i32
    %13 = arith.muli %arg2, %c8_i32 : i32
    %14 = vector.broadcast %13 : i32 to vector<8x1xi32>
    %15 = arith.addi %12, %14 : vector<8x1xi32>
    %16 = arith.sitofp %15 : vector<8x1xi32> to vector<8x1xf32>
    %cst_9 = arith.constant 1.000000e+00 : f32
    %17 = vector.broadcast %cst_9 : f32 to vector<8x1xf32>
    %18 = arith.addf %16, %17 : vector<8x1xf32>
    %cst_10 = arith.constant 1.000000e+00 : f32
    %19 = vector.broadcast %cst_10 : f32 to vector<8x1xf32>
    %20 = arith.divf %19, %18 : vector<8x1xf32>
    %21 = vector.broadcast %20 : vector<8x1xf32> to vector<8x32xf32>
    %22 = arith.mulf %9, %21 : vector<8x32xf32>
    %c0_11 = arith.constant 0 : index
    %c0_12 = arith.constant 0 : index
    %c0_13 = arith.constant 0 : index
    %23 = vector.load %arg5[%c0_11, %c0_12, %c0_13] : memref<1x8x32xf32, #tpu.memory_space<vmem>>, vector<1x8x32xf32>
    %24 = vector.shape_cast %23 : vector<1x8x32xf32> to vector<8x32xf32>
    %25 = vector.shape_cast %22 : vector<8x32xf32> to vector<1x8x32xf32>
    tpu.vector_store %arg5[%c0_11, %c0_12, %c0_13], %25 {strides = array<i32>} : memref<1x8x32xf32, #tpu.memory_space<vmem>>, vector<1x8x32xf32>,
    return
  }
  func.func @transform_0(%arg0: i32, %arg1: i32, %arg2: i32) -> (i32, i32) {
    %c0_i32 = arith.constant 0 : i32
    %c0_i32_0 = arith.constant 0 : i32
    %c0_i32_1 = arith.constant 0 : i32
    return %c0_i32, %c0_i32_0 : i32, i32
  }
  func.func @transform_1(%arg0: i32, %arg1: i32, %arg2: i32) -> (i32, i32, i32) {
    %c0_i32 = arith.constant 0 : i32
    return %arg0, %arg2, %arg1 : i32, i32, i32
  }
  func.func @transform_2(%arg0: i32, %arg1: i32, %arg2: i32) -> (i32, i32, i32) {
    %c0_i32 = arith.constant 0 : i32
    return %arg0, %arg2, %arg1 : i32, i32, i32
  }
}

</mosaic_0001>

<bundles_post_ra>
// kernel: tpu_custom_call.1
= control target key start
LH: loop header
LB: loop body
LE: loop exit
PB: predicated region body
PF: predicated region fallthrough
CT: control target
= control target key end

     0   :  { %7 = vsyncpa [#allocation4], 0  ;;  %s900_s0 = inlined_call_operand.hbm [shape: f32[8,8], index: 0, kind: input, shape index: {}]   ;;  %s901_s1 = inlined_call_operand.hbm [shape: f32[2,8,32], index: 1, kind: input, shape index: {}]   ;;  %s902_s2 = inlined_call_operand.hbm [shape: f32[2,8,32], index: 2, kind: output, shape index: {}]  }
   0x1   :  { %8 = vsyncpa [#allocation7], 0 }
   0x2   :  { %10 = vsyncpa [#allocation7 + $0x1], 0 }
   0x3   :  { %11 = vsyncpa [#allocation5], 0 }
   0x4   :  { %13 = vsyncpa [#allocation5 + $0x1], 0  ;;  %s684_s9 = smov 0   ;;  %s686_s10 = smov 0  }
   0x5   :  { %s688_s11 = smov 0   ;;  %s690_s12 = smov 0  }
   0x6   :  { %s692_s13 = smov 0   ;;  %s694_s14 = smov 0  }
   0x7 LB: > { %s417_s15 = sadd.s32 4294967295, %s662_s14   ;;  %s418_s16 = sadd.s32 4294967294, %s662_s14   ;;  %s662_s14 = sphi %s694_s14, %s19_s14   ;;  %s658_s13 = sphi %s692_s13, %s927_s13   ;;  %s654_s12 = sphi %s690_s12, %s926_s12   ;;  %s650_s11 = sphi %s688_s11, %s925_s11   ;;  %s646_s10 = sphi %s686_s10, %s924_s10   ;;  %s642_s9 = sphi %s684_s9, %s923_s9  }
   0x8   : > { %p83_p0 = scmp.ne.s32.totalorder %s646_s10, %s642_s9  ;;  %p718_p1 = scmp.eq.s32.totalorder %s417_s15, 0 }
   0x9   : > { %p722_p2 = scmp.eq.s32.totalorder %s417_s15, 1  ;;  %p117_p3 = scmp.eq.s32.totalorder %s418_s16, 1 }
   0xa   : > { %s907_s17 = scalar_select %p718_p1, 1, 0 }
   0xb   : > { %s908_s18 = scalar_select %p722_p2, 1, 0 }
   0xc   : > { %p728_p4 = por %p718_p1, %p83_p0  ;;  %p419_p5 = scmp.ge.s32.totalorder %s662_s14, 1 }
   0xd   : > { %p733_p6 = por %p117_p3, %p83_p0  ;;  %p124_p7 = scmp.lt.s32.totalorder %s662_s14, 3 }
   0xe   : > { %s909_s19 = scalar_select %p728_p4, 1, 0 }
   0xf   : > { %s910_s20 = scalar_select %p733_p6, 1, 0 }
  0x10   : > { %p738_p8 = pnand %p419_p5, %p124_p7  ;;  %s664_s22 = smov [#allocation3]  }
  0x11   : > { %s137_s23 = sshll.u32 %s664_s22, 4  ;;  %s38_s25 = sadd.s32 1, %s658_s13  ;;  %s138_s23 = int_to_ptr.vmem [resolvable:$true] %s137_s23 }
  0x12   : > { %s911_s21 = scalar_select %p738_p8, 1, 0 }
  0x13   : > { %p449_p10 = pneg %p738_p8  ;;  %s70_s26 = sadd.s32 1, %s650_s11 }
  0x14   : > { %p753_p12 = scmp.ge.s32.totalorder %s38_s25, 2  ;;  %s518_s30 = scalar_lea.hbm %s900_s0, 128 }
  0x15   : > { %p747_p11 = pnand %p449_p10, %p718_p1  ;;  %p519_p13 = scmp.ne.s32.totalorder %s900_s0, %s518_s30 }
  0x16   : > { %s913_s27 = scalar_select %p753_p12, 1, 0 }
  0x17   : > { %p520_p0 = pneg %p747_p11  ;;  %p525_p7 = scmp.lt.u32.totalorder %s518_s30, %s900_s0 }
  0x19   : > { %p521_p3 = pnand %p520_p0, %p519_p13 }
  0x1b   : > { %p522_p5 = pneg %p521_p3 }
  0x1d   : > { %p527_p10 = pnand %p525_p7, %p522_p5 }
  0x1f   : > { %530 = shalt.err (!%p527_p10)
}
  0x20   : > { %s531_s7 = scalar_lea.vmem %s138_s23, 128  ;;  %p539_p1 = scmp.lt.s32.totalorder %s138_s23, %s138_s23 }
  0x21   : > { %p532_p9 = scmp.ne.s32.totalorder %s138_s23, %s531_s7  ;;  %p540_p8 = scmp.lt.s32.totalorder %s531_s7, %s531_s7 }
  0x23   : > { %p534_p6 = pnand %p532_p9, %p520_p0  ;;  %p541_p2 = por %p540_p8, %p539_p1 }
  0x25   : > { %p535_p4 = pneg %p534_p6 }
  0x27   : > { %p542_p12 = pnand %p541_p2, %p535_p4 }
  0x29   : > { %545 = shalt.err (!%p542_p12)
}
  0x2a   : > { %452 = dma.hbm_to_vmem [thread:$0]  (!%p747_p11), %s900_s0, 128, %s138_s23, [#allocation4]  }
  0x2b   : > { %p914_p1 = scmp.ne.s32.totalorder %s913_s27, 0  ;;  %p77_p2 = scmp.ne.s32.totalorder %s650_s11, %s646_s10 }
  0x2c   : > { %p78_p4 = scmp.eq.s32.totalorder %s662_s14, 0  ;;  %p462_p6 = scmp.lt.s32.totalorder %s662_s14, 2 }
  0x2d   : > { %s929_s25 = smov (%p914_p1, %s38_s25), 0  ;;  %p915_p12 = scmp.ne.s32.totalorder %s908_s18, 0 }
  0x2e   : > { %s63_s16 = ssub.s32 %s658_s13, %s929_s25  ;;  %p79_p9 = por %p78_p4, %p77_p2 }
  0x2f   : > { %p68_p8 = scmp.eq.s32.totalorder %s63_s16, 0  ;;  %p785_p13 = por %p915_p12, %p77_p2 }
  0x30   : > { %s148_s24 = sand.u32 1, %s650_s11   ;;  %s423_s27 = sshll.u32 %s658_s13, 7 }
  0x31   : > { %s793_s28 = scalar_select %p68_p8, %s650_s11, %s70_s26  }
  0x32   : > { %s422_s23 = sshll.u32 %s148_s24, 3  ;;  %s799_s3 = scalar_lea.hbm %s901_s1, %s423_s27 }
  0x33   : > { %s152_s18 = scalar_lea.vmem [#allocation6], %s422_s23  ;;  %p803_p11 = pnand %p462_p6, %p79_p9 }
  0x34   : > { %s161_s4 = sshll.u32 %s152_s18, 4  ;;  %s149_s26 = scalar_lea.sflag [#allocation7], %s148_s24  ;;  %s801_s4 = int_to_ptr.vmem [resolvable:$true] %s161_s4 }
  0x35   : > { %s546_s6 = scalar_lea.hbm %s799_s3, 128  ;;  %p548_p3 = pneg %p803_p11 }
  0x36   : > { %p547_p0 = scmp.ne.s32.totalorder %s799_s3, %s546_s6  ;;  %s551_s15 = scalar_lea.hbm %s901_s1, 256 }
  0x37   : > { %p552_p10 = scmp.lt.u32.totalorder %s799_s3, %s901_s1  ;;  %p553_p1 = scmp.lt.u32.totalorder %s551_s15, %s546_s6 }
  0x38   : > { %p549_p5 = pnand %p548_p3, %p547_p0  ;;  %p555_p4 = scmp.lt.u32.totalorder %s546_s6, %s799_s3 }
  0x39   : > { %p554_p2 = por %p553_p1, %p552_p10 }
  0x3a   : > { %p550_p7 = pneg %p549_p5 }
  0x3b   : > { %p556_p6 = por %p555_p4, %p554_p2 }
  0x3d   : > { %p557_p8 = pnand %p556_p6, %p550_p7 }
  0x3f   : > { %560 = shalt.err (!%p557_p8)
}
  0x40   : > { %s561_s24 = scalar_lea.vmem %s801_s4, 128  ;;  %s665_s27 = smov [#allocation6]  }
  0x41   : > { %p562_p9 = scmp.ne.s32.totalorder %s801_s4, %s561_s24  ;;  %s566_s29 = sshll.u32 %s665_s27, 4  ;;  %s567_s29 = int_to_ptr.vmem [resolvable:$false] %s566_s29 }
  0x42   : > { %s568_s30 = scalar_lea.vmem %s567_s29, 256  ;;  %p569_p5 = scmp.lt.s32.totalorder %s801_s4, %s567_s29 }
  0x43   : > { %p564_p12 = pnand %p562_p9, %p548_p3  ;;  %p570_p10 = scmp.lt.s32.totalorder %s568_s30, %s561_s24 }
  0x45   : > { %p565_p0 = pneg %p564_p12  ;;  %p571_p1 = por %p570_p10, %p569_p5 }
  0x47   : > { %p572_p2 = pnand %p571_p1, %p565_p0 }
  0x49   : > { %575 = shalt.err (!%p572_p2)
}
  0x4a   : > { %456 = dma.hbm_to_vmem [thread:$0]  (!%p803_p11), %s799_s3, 128, %s801_s4, %s149_s26  }
  0x4b   : > { %p918_p7 = scmp.ne.s32.totalorder %s911_s21, 0 }
  0x4c   : > { %p919_p3 = scmp.ne.s32.totalorder (!%p918_p7), %s907_s17, 0 }
  0x4d   : > { %170 = sbr.rel (%p918_p7) target bundleno = 322 (0x142), region = 28 }
  0x54   : > { %629 = dma.done.wait (%p919_p3), [#allocation4], 128  }
  0x55   : > { %631 = vsyncadd (%p919_p3), [#allocation4], 4294967168  ;;  %s839_s18 = sand.u32 1, %s646_s10   ;;  %p920_p4 = scmp.ne.s32.totalorder %s909_s19, 0 }
  0x56   : > { %s426_s6 = sshll.u32 %s839_s18, 3  ;;  %s177_s5 = scalar_lea.sflag [#allocation7], %s839_s18 }
  0x57   : > { %s180_s7 = scalar_lea.vmem [#allocation6], %s426_s6 }
  0x58   : > { %633 = dma.done.wait (%p920_p4), %s177_s5, 128  }
  0x59   : > { %635 = vsyncadd (%p920_p4), %s177_s5, 4294967168  ;;  %vm205_vm0 = vcmask 253952   ;;  %v666_v0 = vmov 0.0   ;;  %vm667_vm1 = vmmov 0   ;;  %vm216_vm2 = vcmask 64512   ;;  %v207_v1 = vld [vmem:[%s180_s7] sm:$0xff] }
  0x5a   : > { %206 = vst.msk [vmem:[#allocation2] sm:$0x1] %vm205_vm0, %v666_v0  ;;  %436 = vmatprep.subr.mxu0 %v666_v0  ;;  %438 = vmatprep.mubr.msk.f32.mxu0 %vm667_vm1, %v666_v0  ;;  %v208_v2 = vld [vmem:[#allocation3] sm:$0xff]  ;;  %v292_v3 = vlaneseq  ;;  %vm290_vm3 = vcmask 261127   ;;  %s431_s17 = sshll.u32 %s654_s12, 7  ;;  %s200_s19 = scalar_lea.vmem [#allocation8], %s426_s6 }
  0x5b   : > { %437 = vmatpush3.msra.mxu0 %v207_v1  ;;  %s320_s21 = sshll.u32 %s200_s19, 4  ;;  %vm302_vm4 = vcmask 261120   ;;  %s851_s26 = scalar_lea.hbm %s902_s2, %s431_s17  ;;  %s853_s21 = int_to_ptr.vmem [resolvable:$true] %s320_s21 }
  0x5c   : > { %439 = vmatmul.mubr.msk.f32.vlgmr.msra.gmra.mrb[0].mxu0 %vm216_vm2, %v208_v2  ;;  %v293_v4 = vshrl.u32 %v292_v3, 7  ;;  %s305_s8 = scalar_lea.sflag [#allocation5], %s839_s18  ;;  %s576_s12 = scalar_lea.vmem %s853_s21, 128 }
  0x5d   : > { %p577_p11 = scmp.ne.s32.totalorder %s853_s21, %s576_s12  ;;  %s668_s15 = smov [#allocation8]  }
  0x5e   : > { %v297_v5 = vcvt.s32.f32 %v293_v4  ;;  %s580_s16 = sshll.u32 %s668_s15, 4  ;;  %s581_s16 = int_to_ptr.vmem [resolvable:$false] %s580_s16 }
  0x5f   : > { %p578_p6 = pnand %p577_p11, %p785_p13  ;;  %s582_s23 = scalar_lea.vmem %s581_s16, 256 }
  0x60   : > { %v298_v6 = vadd.f32 1.0, %v297_v5  ;;  %p583_p9 = scmp.lt.s32.totalorder %s853_s21, %s581_s16  ;;  %p584_p12 = scmp.lt.s32.totalorder %s582_s23, %s576_s12 }
  0x61   : > { %v428_v7 = vld [vmem:[#allocation2] ss:$0 sm:$0xff]  ;;  %p579_p8 = pneg %p578_p6 }
  0x62   : > { %516 = vrcp.f32 %v298_v6  ;;  %p585_p0 = por %p584_p12, %p583_p9 }
  0x64   : > { %p586_p5 = pnand %p585_p0, %p579_p8 }
  0x6c   : > { %v517_v8 = vpop.eup %516 }
 0x12f   : > { %v286_v9 = vpop.f32.mrb[0].mxu0 }
 0x130   : > { %v287_v10 = vadd.f32 %v428_v7, %v286_v9  ;;  %v440_v11 = vpop.f32.mrb[1].mxu0 }
 0x132   : > { %291 = vst.msk [vmem:[#allocation2 - $0x7] sm:$0x80] %vm290_vm3, %v287_v10  ;;  %v301_v12 = vmul.f32 %v517_v8, %v287_v10 }
 0x134   : > { %303 = vst.msk [vmem:[%s200_s19] sm:$0xff] %vm302_vm4, %v301_v12 }
 0x135   : > { %589 = shalt.err (!%p586_p5)
}
 0x136   : > { %s590_s24 = scalar_lea.hbm %s851_s26, 128  ;;  %s594_s30 = scalar_lea.hbm %s902_s2, 256 }
 0x137   : > { %p591_p10 = scmp.ne.s32.totalorder %s851_s26, %s590_s24  ;;  %p595_p7 = scmp.lt.u32.totalorder %s851_s26, %s902_s2 }
 0x138   : > { %p596_p3 = scmp.lt.u32.totalorder %s594_s30, %s590_s24  ;;  %p598_p11 = scmp.lt.u32.totalorder %s590_s24, %s851_s26 }
 0x139   : > { %p592_p1 = pnand %p591_p10, %p785_p13 }
 0x13a   : > { %p597_p4 = por %p596_p3, %p595_p7 }
 0x13b   : > { %p593_p2 = pneg %p592_p1 }
 0x13c   : > { %p599_p6 = por %p598_p11, %p597_p4 }
 0x13e   : > { %p600_p8 = pnand %p599_p6, %p593_p2 }
 0x140   : > { %603 = shalt.err (!%p600_p8)
}
 0x141   : > { %447 = dma.vmem_to_hbm [thread:$0]  (%p785_p13), %s853_s21, 128, %s851_s26, %s305_s8  }
 0x142 PF: > { %s332_s5 = sand.u32 1, %s642_s9   ;;  %p921_p9 = scmp.ne.s32.totalorder %s910_s20, 0 }
 0x143   : > { %p922_p12 = scmp.ge.s32.totalorder %s662_s14, 2  ;;  %s333_s7 = scalar_lea.sflag [#allocation5], %s332_s5 }
 0x145   : > { %p458_p0 = pnand %p922_p12, %p921_p9 }
 0x147   : > { %637 = dma.done.wait (!%p458_p0), %s333_s7, 128  }
 0x148   : > { %639 = vsyncadd (!%p458_p0), %s333_s7, 4294967168  ;;  %s19_s14 = sadd.s32 1, %s662_s14   ;;  %s923_s9 = smov %s646_s10 }
 0x149   : > { %p16_p5 = scmp.ge.s32.totalorder %s19_s14, 4   ;;  %s924_s10 = smov %s650_s11 }
 0x14a   : > { %s925_s11 = smov %s793_s28  ;;  %s926_s12 = smov %s658_s13 }
 0x14b   : > { %s927_s13 = smov %s929_s25  ;;  %18 = sbr.rel (!%p16_p5) target bundleno = 7 (0x7), region = 82 }
 0x152   :  { %338 = vsyncpa [#allocation4], 1 }
 0x153   :  { %340 = vsyncpa [#allocation4 + $0x1], 1 }
 0x154   :  { %341 = vsyncpa [#allocation7], 1 }
 0x155   :  { %343 = vsyncpa [#allocation7 + $0x1], 1 }
 0x156   :  { %344 = vsyncpa [#allocation5], 1 }
 0x157   :  { %346 = vsyncpa [#allocation5 + $0x1], 1 }

</bundles_post_ra>
